<compile_context>
chip_gen: v7x
topology: tpu7x:2x2x1
jax: 0.10.0
libtpu: 0.0.40
codegen_flags: <defaults>
</compile_context>

<pallas_src>
import numpy as np
import jax
import jax.numpy as jnp
from jax.experimental import pallas as pl
from jax.experimental.pallas import tpu as pltpu


def _jodie_kernel(h_ref, td_ref, w_ref, b1_ref, o_ref):
    # h_ref: (TN, D) native dtype; td_ref: (TN, 1) f32;
    # w_ref/b1_ref: (1, D) f32 (resident); o_ref: (TN, D) native dtype.
    scale = td_ref[...] * w_ref[...] + b1_ref[...]            # rank-1 FMA on the VPU
    o_ref[...] = (h_ref[...].astype(jnp.float32) * scale).astype(o_ref.dtype)


def _default_vmem_budget_bytes():
    """Generation-aware VMEM budget: big on v5e/v6e (128 MiB), safer on v7x (64 MiB)."""
    try:
        phys = pltpu.get_tpu_info().vmem_capacity_bytes
    except Exception:
        phys = 64 * 1024 * 1024  # conservative fallback
    # 5/8 of physical, capped at 48 MiB: v5e/v6e -> 48 MiB, v7x -> 40 MiB.
    return int(min(48 * 1024 * 1024, max(8 * 1024 * 1024, (phys * 5) // 8)))


def jodie_time_embedding(h, mem_ts, ts, weight, bias, *, tile_n=None,
                         vmem_budget_bytes=None):
    """h: (N, D) any float dtype; mem_ts, ts: (N,); weight: (D,) = Linear.weight[:, 0];
    bias: (D,). Returns (N, D) in h.dtype."""
    n, dim = h.shape
    f32 = jnp.float32
    out_dtype = h.dtype

    if vmem_budget_bytes is None:
        vmem_budget_bytes = _default_vmem_budget_bytes()

    # --- host-side prep (tiny, O(N) / O(D)) ---------------------------------
    ts32 = ts.astype(f32)
    td_col = jnp.reshape((ts32 - mem_ts.astype(f32)) / (ts32 + 1.0), (n, 1))
    w_row = jnp.reshape(weight.astype(f32), (1, dim))
    b1_row = jnp.reshape(1.0 + bias.astype(f32), (1, dim))     # fold the "1 +" into bias

    # Lane-dense feature dim: pad to a multiple of 128 (padded bias row is 0 ->
    # padded output is harmless; we slice it off below).
    dim_p = max(128, ((dim + 127) // 128) * 128)
    if dim_p != dim:
        h_in = jnp.pad(h, ((0, 0), (0, dim_p - dim)))
        w_row = jnp.pad(w_row, ((0, 0), (0, dim_p - dim)))
        b1_row = jnp.pad(b1_row, ((0, 0), (0, dim_p - dim)))
    else:
        h_in = h

    # --- pick the biggest VMEM-safe row tile --------------------------------
    h_bytes = jnp.dtype(out_dtype).itemsize
    # Double-buffered per-row bytes: h-in + out (dim_p lanes each) plus the one
    # (TN, 1) f32 td column which is lane-padded to 128 lanes in VMEM.
    bytes_per_row = 2 * (2 * h_bytes * dim_p + 128 * 4)
    # Resident (1, dim_p) f32 rows (sublane-padded to 8, double-buffered) plus
    # ~1 MiB headroom for compiler-internal scratch.
    resident_bytes = 2 * 2 * 8 * dim_p * 4
    scratch_reserve = 1 * 1024 * 1024
    avail = max(bytes_per_row * 8, vmem_budget_bytes - resident_bytes - scratch_reserve)
    cap = max(8, (avail // bytes_per_row) // 8 * 8)

    n_rows8 = ((n + 7) // 8) * 8
    tn = cap if tile_n is None else min(tile_n, cap)
    tn = min(tn, n_rows8)                       # no block bigger than the data
    # Keep >= 4 grid steps when there is enough work: shards across v7x's 2 TCs
    # and gives pipeline depth to hide prologue/epilogue DMA on all generations.
    min_steps = 4
    if n_rows8 >= min_steps * 8:
        tn = min(tn, ((pl.cdiv(n, min_steps) + 7) // 8) * 8)
    tn = max(8, (tn // 8) * 8)

    grid = (pl.cdiv(n, tn),)                    # ragged last block masked by Pallas

    out = pl.pallas_call(
        _jodie_kernel,
        out_shape=jax.ShapeDtypeStruct((n, dim_p), out_dtype),
        grid=grid,
        in_specs=[
            pl.BlockSpec((tn, dim_p), lambda i: (i, 0)),   # h tile (native dtype)
            pl.BlockSpec((tn, 1), lambda i: (i, 0)),       # time_diff column tile
            pl.BlockSpec((1, dim_p), lambda i: (0, 0)),    # weight row (resident)
            pl.BlockSpec((1, dim_p), lambda i: (0, 0)),    # (1 + bias) row (resident)
        ],
        out_specs=pl.BlockSpec((tn, dim_p), lambda i: (i, 0)),
        compiler_params=pltpu.CompilerParams(
            dimension_semantics=("parallel",),
            vmem_limit_bytes=int(vmem_budget_bytes + 4 * 1024 * 1024),
        ),
    )(h_in, td_col, w_row, b1_row)

    if dim_p != dim:
        out = out[:, :dim]
    return out


if __name__ == "__main__":
    dim_out = 128     # lane-dense output width
    n = 16            # small number of nodes / events

    key = jax.random.PRNGKey(0)
    k_h, k_w, k_b, k_ts, k_dt = jax.random.split(key, 5)

    h = jax.random.normal(k_h, (n, dim_out), dtype=jnp.float32)
    # NormalLinear(1, dim_out): stdv = 1/sqrt(1) = 1 -> N(0, 1) weight and bias.
    weight = jax.random.normal(k_w, (dim_out,), dtype=jnp.float32)
    bias = jax.random.normal(k_b, (dim_out,), dtype=jnp.float32)
    ts = jax.random.uniform(k_ts, (n,), dtype=jnp.float32) * 100.0
    mem_ts = ts - jax.random.uniform(k_dt, (n,), dtype=jnp.float32) * 10.0

    out = jodie_time_embedding(h, mem_ts, ts, weight, bias)
    out = jax.block_until_ready(out)

    # Plain-JAX reference mirroring the PyTorch forward.
    td = (ts - mem_ts) / (ts + 1.0)
    ref = h * (1.0 + td[:, None] * weight[None, :] + bias[None, :])
    assert out.shape == (n, dim_out)
    assert out.dtype == h.dtype
    np.testing.assert_allclose(np.asarray(out), np.asarray(ref), rtol=1e-5, atol=1e-5)

    # Also exercise the bf16 / non-128-aligned / large-N paths once.
    n2, d2 = 2048, 96
    h2 = jax.random.normal(k_h, (n2, d2), dtype=jnp.bfloat16)
    w2 = jax.random.normal(k_w, (d2,), dtype=jnp.float32)
    b2 = jax.random.normal(k_b, (d2,), dtype=jnp.float32)
    ts2 = jax.random.uniform(k_ts, (n2,), dtype=jnp.float32) * 100.0
    mem2 = ts2 - jax.random.uniform(k_dt, (n2,), dtype=jnp.float32) * 10.0
    out2 = jax.block_until_ready(jodie_time_embedding(h2, mem2, ts2, w2, b2))
    td2 = (ts2 - mem2) / (ts2 + 1.0)
    ref2 = (h2.astype(jnp.float32)
            * (1.0 + td2[:, None] * w2[None, :] + b2[None, :])).astype(jnp.bfloat16)
    assert out2.shape == (n2, d2) and out2.dtype == jnp.bfloat16
    np.testing.assert_allclose(np.asarray(out2, dtype=np.float32),
                               np.asarray(ref2, dtype=np.float32), rtol=2e-2, atol=2e-2)

    print("KERNEL_OK")
</pallas_src>

<mosaic_0001>
module attributes {stable_mosaic.version = 11 : i64} {
  func.func @_jodie_kernel(%arg0: i32, %arg1: memref<16x128xf32, #tpu.memory_space<vmem>>, %arg2: memref<16x1xf32, #tpu.memory_space<vmem>>, %arg3: memref<1x128xf32, #tpu.memory_space<vmem>>, %arg4: memref<1x128xf32, #tpu.memory_space<vmem>>, %arg5: memref<16x128xf32, #tpu.memory_space<vmem>>) attributes {dimension_semantics = [#tpu.dimension_semantics<parallel>], iteration_bounds = array<i64: 1>, scalar_prefetch = 0 : i64, scratch_operands = 0 : i64, tpu.core_type = #tpu.core_type<tc>, window_params = [{transform_indices = @transform_0, window_bounds = array<i64: 16, 128>}, {transform_indices = @transform_1, window_bounds = array<i64: 16, 1>}, {pipeline_mode = #tpu.pipeline_mode<synchronous>, transform_indices = @transform_2, window_bounds = array<i64: 1, 128>}, {pipeline_mode = #tpu.pipeline_mode<synchronous>, transform_indices = @transform_3, window_bounds = array<i64: 1, 128>}, {transform_indices = @transform_4, window_bounds = array<i64: 16, 128>}]} {
    %c0 = arith.constant 0 : index
    %c0_0 = arith.constant 0 : index
    %0 = vector.load %arg2[%c0, %c0_0] : memref<16x1xf32, #tpu.memory_space<vmem>>, vector<16x1xf32>
    %c0_1 = arith.constant 0 : index
    %c0_2 = arith.constant 0 : index
    %1 = vector.load %arg3[%c0_1, %c0_2] : memref<1x128xf32, #tpu.memory_space<vmem>>, vector<1x128xf32>
    %2 = vector.broadcast %0 : vector<16x1xf32> to vector<16x128xf32>
    %3 = vector.broadcast %1 : vector<1x128xf32> to vector<16x128xf32>
    %4 = arith.mulf %2, %3 : vector<16x128xf32>
    %c0_3 = arith.constant 0 : index
    %c0_4 = arith.constant 0 : index
    %5 = vector.load %arg4[%c0_3, %c0_4] : memref<1x128xf32, #tpu.memory_space<vmem>>, vector<1x128xf32>
    %6 = vector.broadcast %5 : vector<1x128xf32> to vector<16x128xf32>
    %7 = arith.addf %4, %6 : vector<16x128xf32>
    %c0_5 = arith.constant 0 : index
    %c0_6 = arith.constant 0 : index
    %8 = vector.load %arg1[%c0_5, %c0_6] : memref<16x128xf32, #tpu.memory_space<vmem>>, vector<16x128xf32>
    %9 = arith.mulf %8, %7 : vector<16x128xf32>
    %c0_7 = arith.constant 0 : index
    %c0_8 = arith.constant 0 : index
    %10 = vector.load %arg5[%c0_7, %c0_8] : memref<16x128xf32, #tpu.memory_space<vmem>>, vector<16x128xf32>
    tpu.vector_store %arg5[%c0_7, %c0_8], %9 {strides = array<i32>} : memref<16x128xf32, #tpu.memory_space<vmem>>, vector<16x128xf32>,
    return
  }
  func.func @transform_0(%arg0: i32) -> (i32, i32) {
    %c0_i32 = arith.constant 0 : i32
    %c0_i32_0 = arith.constant 0 : i32
    return %arg0, %c0_i32 : i32, i32
  }
  func.func @transform_1(%arg0: i32) -> (i32, i32) {
    %c0_i32 = arith.constant 0 : i32
    %c0_i32_0 = arith.constant 0 : i32
    return %arg0, %c0_i32 : i32, i32
  }
  func.func @transform_2(%arg0: i32) -> (i32, i32) {
    %c0_i32 = arith.constant 0 : i32
    %c0_i32_0 = arith.constant 0 : i32
    %c0_i32_1 = arith.constant 0 : i32
    return %c0_i32, %c0_i32_0 : i32, i32
  }
  func.func @transform_3(%arg0: i32) -> (i32, i32) {
    %c0_i32 = arith.constant 0 : i32
    %c0_i32_0 = arith.constant 0 : i32
    %c0_i32_1 = arith.constant 0 : i32
    return %c0_i32, %c0_i32_0 : i32, i32
  }
  func.func @transform_4(%arg0: i32) -> (i32, i32) {
    %c0_i32 = arith.constant 0 : i32
    %c0_i32_0 = arith.constant 0 : i32
    return %arg0, %c0_i32 : i32, i32
  }
}

</mosaic_0001>

<bundles_post_ra>
// kernel: tpu_custom_call.1
= control target key start
LH: loop header
LB: loop body
LE: loop exit
PB: predicated region body
PF: predicated region fallthrough
CT: control target
= control target key end

     0   :  { %v101_v1 = vmov 0   ;;  %s160_s0 = inlined_call_operand.vmem [shape: f32[16,128], index: 0, kind: input, shape index: {}]   ;;  %s161_s1 = inlined_call_operand.vmem [shape: f32[16,1], index: 1, kind: input, shape index: {}]   ;;  %s162_s2 = inlined_call_operand.vmem [shape: f32[1,128], index: 2, kind: input, shape index: {}]   ;;  %s163_s3 = inlined_call_operand.vmem [shape: f32[1,128], index: 3, kind: input, shape index: {}]   ;;  %s164_s4 = inlined_call_operand.hbm [shape: f32[16,128], index: 4, kind: output, shape index: {}]  }
   0x1   :  { %v18_v0 = vld [vmem:[%s161_s1] sm:$0xff]  ;;  %76 = vset.pattern.permute.xlu0 %v101_v1 }
   0x2   :  { %9 = vsyncpa [#allocation3], 0  ;;  %23 = vperm.xlu0 %76, %v18_v0   ;;  %v19_v2 = vld [vmem:[%s161_s1 + $0x8] sm:$0xff]  ;;  %v70_v3 = vld [vmem:[%s162_s2] ss:$0 sm:$0xff]  ;;  %s102_s1 = smov [#allocation2]  }
   0x3   :  { %v71_v4 = vld [vmem:[%s163_s3] ss:$0 sm:$0xff]  ;;  %s59_s25 = sshll.u32 %s102_s1, 4  ;;  %v49_v12 = vld [vmem:[%s160_s0 + $0x8] sm:$0xff]  ;;  %s60_s25 = int_to_ptr.vmem [resolvable:$true] %s59_s25 }
   0x4   :  { %v48_v7 = vld [vmem:[%s160_s0] sm:$0xff]  ;;  %s77_s2 = scalar_lea.vmem %s60_s25, 256  ;;  %p82_p1 = scmp.lt.s32.totalorder %s60_s25, %s60_s25 }
   0x5   :  { %p78_p0 = scmp.ne.s32.totalorder %s60_s25, %s77_s2  ;;  %p83_p2 = scmp.lt.s32.totalorder %s77_s2, %s77_s2 }
   0x6   :  { %28 = vperm.xlu0 %76, %v19_v2  }
   0x7   :  { %p84_p3 = por %p83_p2, %p82_p1 }
   0x9   :  { %p85_p4 = pnand %p84_p3, %p78_p0 }
  0x81   :  { %v24_v5 = vpop.permute.xlu0 %23 }
  0x82   :  { %v37_v6 = vmul.f32 %v70_v3, %v24_v5 }
  0x84   :  { %v46_v8 = vadd.f32 %v71_v4, %v37_v6 }
  0x85   :  { %v29_v9 = vpop.permute.xlu0 %28 }
  0x86   :  { %v50_v10 = vmul.f32 %v48_v7, %v46_v8  ;;  %v38_v11 = vmul.f32 %v70_v3, %v29_v9 }
  0x88   :  { %52 = vst [vmem:[#allocation2] sm:$0xff] %v50_v10  ;;  %v47_v13 = vadd.f32 %v71_v4, %v38_v11 }
  0x8a   :  { %v51_v14 = vmul.f32 %v49_v12, %v47_v13 }
  0x8c   :  { %53 = vst [vmem:[#allocation2 + $0x8] sm:$0xff] %v51_v14 }
  0x8d   :  { %88 = shalt.err (!%p85_p4)
}
  0x8e   :  { %s89_s29 = scalar_lea.hbm %s164_s4, 256 }
  0x8f   :  { %p90_p5 = scmp.ne.s32.totalorder %s164_s4, %s89_s29  ;;  %p93_p6 = scmp.lt.u32.totalorder %s89_s29, %s164_s4 }
  0x91   :  { %p95_p7 = pnand %p93_p6, %p90_p5 }
  0x93   :  { %98 = shalt.err (!%p95_p7)
}
  0x94   :  { %s103_s7 = smov 128   ;;  %s104_s8 = smov 8  }
  0x95   :  { %65 = dma.vmem_to_hbm [thread:$0]  %s60_s25, 256, %s164_s4, [#allocation3], %s103_s7, %s103_s7, %s104_s8  }
  0x96   :  { %99 = dma.done.wait [#allocation3], 256  }
  0x97   :  { %100 = vsyncadd [#allocation3], 4294967040 }
  0x98   :  { %69 = vsyncpa [#allocation3], 1 }

</bundles_post_ra>
